<compile_context>
chip_gen: v5e
topology: v5e:2x2
jax: 0.10.0
libtpu: 0.0.40
codegen_flags: <defaults>
</compile_context>

<pallas_src>
import functools

import jax
import jax.numpy as jnp
from jax import lax
from jax.experimental import pallas as pl
from jax.experimental.pallas import tpu as pltpu

_MIB = 1024 * 1024


def _round_up(v, m):
    return -(-v // m) * m


def _vmem_capacity_bytes():
    try:
        return int(pltpu.get_tpu_info().vmem_capacity_bytes)
    except Exception:
        return 64 * _MIB  # conservative fallback (v7x per-TensorCore VMEM)


def _vmem_limit_bytes():
    cap = _vmem_capacity_bytes()
    return int(min(cap - 8 * _MIB, 64 * _MIB))


def _row_tiling(M, N, itemsize, tm_req, planes):
    """Row-band tiling: returns (TM, halo_block_rows, n_halo_blocks, num_tiles)."""
    np_phys = _round_up(N, 128)  # physical lane footprint of one row in VMEM
    ws_budget = min(_vmem_capacity_bytes() // 2, 48 * _MIB)
    # `planes` row-bands of (TM, N) stream per grid step, double buffered.
    tm_cap = ws_budget // (2 * planes * np_phys * itemsize)
    tm_cap = max(8, (tm_cap // 8) * 8)
    if M <= 8:
        TM = M
        hb = M
    else:
        tm_req = max(8, (int(tm_req) // 8) * 8)
        # Guarantee >= 2 row tiles so the "parallel" axis can feed both TCs (v7x).
        half = _round_up(-(-M // 2), 8)
        TM = min(tm_req, tm_cap, half)
        hb = 8
    num_tiles = -(-M // TM)
    n_halo_blocks = -(-M // hb)
    return TM, hb, n_halo_blocks, num_tiles


# ----------------------------------------------------------------------------
# Standalone ForwardWeightedGradient kernel (explicit w, materializes g).
# ----------------------------------------------------------------------------
def _fwg_kernel(x_ref, xhalo_ref, w_ref, o_ref, *, m_total):
    # x_ref: (1, TM, N), xhalo_ref: (1, hb, N), w_ref / o_ref: (2, TM, N).
    x = x_ref[0]
    TM, N = x.shape

    # Horizontal forward diff; replicating the last column pins g[0, :, N-1] = 0.
    if N > 1:
        x_right = jnp.concatenate([x[:, 1:], x[:, N - 1:N]], axis=1)
    else:
        x_right = x
    o_ref[0] = (x_right - x) * w_ref[0]

    # Vertical forward diff; splice in the halo row (first row of the next tile),
    # then zero every row at/after the true bottom image row.
    halo = xhalo_ref[0, 0:1, :]
    if TM > 1:
        x_down = jnp.concatenate([x[1:, :], halo], axis=0)
    else:
        x_down = halo
    row = lax.broadcasted_iota(jnp.int32, (TM, 1), 0) + pl.program_id(0) * TM
    gy = jnp.where(row < m_total - 1, x_down - x, 0.0).astype(x.dtype)
    o_ref[1] = gy * w_ref[1]


def forward_weighted_gradient(x, w, *, tm=512):
    """x: (1, M, N), w: (2, M, N) -> weighted forward gradient (2, M, N)."""
    assert x.ndim == 3 and x.shape[0] == 1, "x must be (1, M, N)"
    assert w.shape == (2,) + x.shape[1:], "w must be (2, M, N)"
    _, M, N = x.shape
    # Per grid step: x(1) + w(2) + out(2) row-bands (halo is negligible).
    TM, hb, nbh, num_tiles = _row_tiling(M, N, x.dtype.itemsize, tm, planes=5)
    halo_per_tile = TM // hb

    x_spec = pl.BlockSpec((1, TM, N), lambda i: (0, i, 0))
    halo_spec = pl.BlockSpec(
        (1, hb, N),
        lambda i: (0, jnp.minimum((i + 1) * halo_per_tile, nbh - 1), 0))
    wg_spec = pl.BlockSpec((2, TM, N), lambda i: (0, i, 0))

    return pl.pallas_call(
        functools.partial(_fwg_kernel, m_total=M),
        out_shape=jax.ShapeDtypeStruct((2, M, N), x.dtype),
        grid=(num_tiles,),
        in_specs=[x_spec, halo_spec, wg_spec],
        out_specs=wg_spec,
        compiler_params=pltpu.CompilerParams(
            dimension_semantics=("parallel",),
            vmem_limit_bytes=_vmem_limit_bytes(),
        ),
    )(x, x, w)


# ----------------------------------------------------------------------------
# Fused PrimalGeneralEnergyROF kernel (w == 1 path): per-tile partial sums only.
# ----------------------------------------------------------------------------
def _rof_energy_kernel(x_ref, xhalo_ref, obs_ref, reg_ref, data_ref, *,
                       m_total, rows_ragged):
    x = x_ref[0].astype(jnp.float32)          # (TM, N)
    TM, N = x.shape
    row0 = pl.program_id(0) * TM

    if rows_ragged:
        row = lax.broadcasted_iota(jnp.int32, (TM, 1), 0) + row0
        row_ok = row < m_total

    # ---- sum |horizontal forward diff| (last column contributes 0 by shape) ----
    if N > 1:
        dx = jnp.abs(x[:, 1:] - x[:, :-1])    # (TM, N-1)
        if rows_ragged:
            dx = jnp.where(row_ok, dx, 0.0)
        reg = jnp.sum(dx)
    else:
        reg = jnp.float32(0.0)

    # ---- sum |vertical forward diff|, local rows 0 .. TM-2 ----
    if TM > 1:
        dy = jnp.abs(x[1:, :] - x[:-1, :])    # (TM-1, N)
        if rows_ragged:
            dy = jnp.where(row[:-1] < m_total - 1, dy, 0.0)
        reg = reg + jnp.sum(dy)

    # ---- vertical diff of the last local row via the halo (next tile's 1st row);
    #      only counts when that row is strictly above the bottom image row.
    halo = xhalo_ref[0, 0:1, :].astype(jnp.float32)     # (1, N)
    dy_last = jnp.abs(halo - x[TM - 1:TM, :])
    last_ok = (row0 + TM - 1) < (m_total - 1)
    reg = reg + jnp.sum(jnp.where(last_ok, dy_last, 0.0))

    # ---- data term: sum (x - img_obs)^2 over valid rows ----
    d = x - obs_ref[0].astype(jnp.float32)
    d2 = d * d
    if rows_ragged:
        d2 = jnp.where(row_ok, d2, 0.0)
    data = jnp.sum(d2)

    reg_ref[...] = jnp.full((1, 1, 128), reg, dtype=jnp.float32)
    data_ref[...] = jnp.full((1, 1, 128), data, dtype=jnp.float32)


def primal_general_energy_rof(x, b, H, img_obs, clambda, w=None, *, tm=512):
    """Primal ROF energy = ||w * grad(x)||_1 + 0.5 * clambda * ||x - img_obs||_2."""
    del b, H  # unused by the reference forward
    assert x.ndim == 3 and x.shape[0] == 1 and img_obs.shape == x.shape

    if w is not None:
        # Non-reference path with an explicit weight: materialize the gradient.
        g = forward_weighted_gradient(x, w, tm=tm)
        diff = x - img_obs
        return jnp.sum(jnp.abs(g)) + 0.5 * clambda * jnp.sqrt(jnp.sum(diff * diff))

    # TODO(synk): the original module passes `torch.cuda.FloatTensor` (a dtype, not
    # a tensor) as the gradient weight, which is a bug in the reference; we
    # interpret it as an unweighted gradient (w == 1) and fuse both reductions.
    _, M, N = x.shape
    # Per grid step: x(1) + img_obs(1) row-bands stream (halo/partials negligible).
    TM, hb, nbh, num_tiles = _row_tiling(M, N, x.dtype.itemsize, tm, planes=2)
    halo_per_tile = TM // hb
    rows_ragged = (M % TM) != 0

    band_spec = pl.BlockSpec((1, TM, N), lambda i: (0, i, 0))
    halo_spec = pl.BlockSpec(
        (1, hb, N),
        lambda i: (0, jnp.minimum((i + 1) * halo_per_tile, nbh - 1), 0))
    part_spec = pl.BlockSpec((1, 1, 128), lambda i: (i, 0, 0))
    part_shape = jax.ShapeDtypeStruct((num_tiles, 1, 128), jnp.float32)

    reg_p, data_p = pl.pallas_call(
        functools.partial(_rof_energy_kernel, m_total=M, rows_ragged=rows_ragged),
        out_shape=(part_shape, part_shape),
        grid=(num_tiles,),
        in_specs=[band_spec, halo_spec, band_spec],
        out_specs=(part_spec, part_spec),
        compiler_params=pltpu.CompilerParams(
            dimension_semantics=("parallel",),
            vmem_limit_bytes=_vmem_limit_bytes(),
        ),
    )(x, x, img_obs)

    energy_reg = jnp.sum(reg_p[:, 0, 0])
    energy_data = 0.5 * clambda * jnp.sqrt(jnp.sum(data_p[:, 0, 0]))
    return energy_reg + energy_data


# ----------------------------------------------------------------------------
# Pure-JAX references for validation.
# ----------------------------------------------------------------------------
def _reference_gradient(x, w):
    _, M, N = x.shape
    g = jnp.zeros((2, M, N), x.dtype)
    g = g.at[0, :, :-1].set(x[0, :, 1:] - x[0, :, :-1])
    g = g.at[1, :-1, :].set(x[0, 1:, :] - x[0, :-1, :])
    return g * w


def _reference_energy(x, img_obs, clambda):
    g = _reference_gradient(x, jnp.ones((2,) + x.shape[1:], x.dtype))
    return jnp.sum(jnp.abs(g)) + 0.5 * clambda * jnp.sqrt(jnp.sum((x - img_obs) ** 2))


if __name__ == "__main__":
    key = jax.random.PRNGKey(0)
    kx, kw, ko, kx2, kw2, ko2 = jax.random.split(key, 6)

    # --- test 1: standalone weighted-gradient kernel --------------------------
    M, N = 16, 16
    x = jax.random.normal(kx, (1, M, N), dtype=jnp.float32)
    w = jax.random.normal(kw, (2, M, N), dtype=jnp.float32)
    g = jax.block_until_ready(forward_weighted_gradient(x, w))
    assert g.shape == (2, M, N)
    assert jnp.allclose(g, _reference_gradient(x, w), atol=1e-5, rtol=1e-5)

    # --- test 2: weighted gradient, ragged rows (M % TM != 0), N % 128 != 0 ---
    M2, N2 = 40, 20
    x2 = jax.random.normal(kx2, (1, M2, N2), dtype=jnp.float32)
    w2 = jax.random.normal(kw2, (2, M2, N2), dtype=jnp.float32)
    g2 = jax.block_until_ready(forward_weighted_gradient(x2, w2, tm=16))
    assert g2.shape == (2, M2, N2)
    assert jnp.allclose(g2, _reference_gradient(x2, w2), atol=1e-5, rtol=1e-5)

    # --- test 3: fused PrimalGeneralEnergyROF forward --------------------------
    img_obs = jax.random.normal(ko, (1, M, N), dtype=jnp.float32)
    b = jnp.zeros((1, M, N), jnp.float32)     # unused by the reference forward
    Hmat = jnp.eye(N, dtype=jnp.float32)      # unused by the reference forward
    clambda = 0.7
    energy = jax.block_until_ready(
        primal_general_energy_rof(x, b, Hmat, img_obs, clambda))
    assert jnp.allclose(energy, _reference_energy(x, img_obs, clambda),
                        atol=1e-3, rtol=1e-4)

    # --- test 4: fused energy on the ragged / non-128 shape --------------------
    img_obs2 = jax.random.normal(ko2, (1, M2, N2), dtype=jnp.float32)
    b2 = jnp.zeros((1, M2, N2), jnp.float32)
    H2 = jnp.eye(N2, dtype=jnp.float32)
    energy2 = jax.block_until_ready(
        primal_general_energy_rof(x2, b2, H2, img_obs2, clambda, tm=16))
    assert jnp.allclose(energy2, _reference_energy(x2, img_obs2, clambda),
                        atol=1e-3, rtol=1e-4)

    print("KERNEL_OK")
</pallas_src>

<mosaic_0001>
module attributes {stable_mosaic.version = 11 : i64} {
  func.func @_fwg_kernel(%arg0: i32, %arg1: memref<1x8x16xf32, #tpu.memory_space<vmem>>, %arg2: memref<1x8x16xf32, #tpu.memory_space<vmem>>, %arg3: memref<2x8x16xf32, #tpu.memory_space<vmem>>, %arg4: memref<2x8x16xf32, #tpu.memory_space<vmem>>) attributes {dimension_semantics = [#tpu.dimension_semantics<parallel>], iteration_bounds = array<i64: 2>, scalar_prefetch = 0 : i64, scratch_operands = 0 : i64, tpu.core_type = #tpu.core_type<tc>, window_params = [{transform_indices = @transform_0, window_bounds = array<i64: 1, 8, 16>}, {transform_indices = @transform_1, window_bounds = array<i64: 1, 8, 16>}, {transform_indices = @transform_2, window_bounds = array<i64: 2, 8, 16>}, {transform_indices = @transform_3, window_bounds = array<i64: 2, 8, 16>}]} {
    %c0 = arith.constant 0 : index
    %c0_0 = arith.constant 0 : index
    %c0_1 = arith.constant 0 : index
    %0 = vector.load %arg1[%c0, %c0_0, %c0_1] : memref<1x8x16xf32, #tpu.memory_space<vmem>>, vector<1x8x16xf32>
    %1 = vector.shape_cast %0 : vector<1x8x16xf32> to vector<8x16xf32>
    %2 = vector.extract_strided_slice %1 {offsets = [0, 1], sizes = [8, 15], strides = [1, 1]} : vector<8x16xf32> to vector<8x15xf32>
    %3 = vector.extract_strided_slice %1 {offsets = [0, 15], sizes = [8, 1], strides = [1, 1]} : vector<8x16xf32> to vector<8x1xf32>
    %4 = tpu.concatenate %2, %3 in 1 : vector<8x15xf32>, vector<8x1xf32> -> vector<8x16xf32>
    %5 = arith.subf %4, %1 : vector<8x16xf32>
    %c0_2 = arith.constant 0 : index
    %c0_3 = arith.constant 0 : index
    %c0_4 = arith.constant 0 : index
    %6 = vector.load %arg3[%c0_2, %c0_3, %c0_4] : memref<2x8x16xf32, #tpu.memory_space<vmem>>, vector<1x8x16xf32>
    %7 = vector.shape_cast %6 : vector<1x8x16xf32> to vector<8x16xf32>
    %8 = arith.mulf %5, %7 : vector<8x16xf32>
    %c0_5 = arith.constant 0 : index
    %c0_6 = arith.constant 0 : index
    %c0_7 = arith.constant 0 : index
    %9 = vector.load %arg4[%c0_5, %c0_6, %c0_7] : memref<2x8x16xf32, #tpu.memory_space<vmem>>, vector<1x8x16xf32>
    %10 = vector.shape_cast %9 : vector<1x8x16xf32> to vector<8x16xf32>
    %11 = vector.shape_cast %8 : vector<8x16xf32> to vector<1x8x16xf32>
    tpu.vector_store %arg4[%c0_5, %c0_6, %c0_7], %11 {strides = array<i32>} : memref<2x8x16xf32, #tpu.memory_space<vmem>>, vector<1x8x16xf32>,
    %c0_8 = arith.constant 0 : index
    %c0_9 = arith.constant 0 : index
    %c0_10 = arith.constant 0 : index
    %12 = vector.load %arg2[%c0_8, %c0_9, %c0_10] : memref<1x8x16xf32, #tpu.memory_space<vmem>>, vector<1x1x16xf32>
    %13 = vector.shape_cast %12 : vector<1x1x16xf32> to vector<1x16xf32>
    %14 = vector.extract_strided_slice %1 {offsets = [1, 0], sizes = [7, 16], strides = [1, 1]} : vector<8x16xf32> to vector<7x16xf32>
    %15 = tpu.concatenate %14, %13 in 0 : vector<7x16xf32>, vector<1x16xf32> -> vector<8x16xf32>
    %16 = tpu.iota {dimensions = array<i32: 0>} : vector<8x1xi32>
    %c8_i32 = arith.constant 8 : i32
    %17 = arith.muli %arg0, %c8_i32 : i32
    %18 = vector.broadcast %17 : i32 to vector<8x1xi32>
    %19 = arith.addi %16, %18 : vector<8x1xi32>
    %c15_i32 = arith.constant 15 : i32
    %20 = vector.broadcast %c15_i32 : i32 to vector<8x1xi32>
    %21 = arith.cmpi slt, %19, %20 : vector<8x1xi32>
    %22 = arith.subf %15, %1 : vector<8x16xf32>
    %cst = arith.constant 0.000000e+00 : f32
    %23 = vector.shape_cast %21 : vector<8x1xi1> to vector<8x1xi1>
    %24 = vector.broadcast %23 : vector<8x1xi1> to vector<8x16xi1>
    %25 = vector.broadcast %cst : f32 to vector<8x16xf32>
    %26 = arith.select %24, %22, %25 : vector<8x16xi1>, vector<8x16xf32>
    %c1 = arith.constant 1 : index
    %c0_11 = arith.constant 0 : index
    %c0_12 = arith.constant 0 : index
    %27 = vector.load %arg3[%c1, %c0_11, %c0_12] : memref<2x8x16xf32, #tpu.memory_space<vmem>>, vector<1x8x16xf32>
    %28 = vector.shape_cast %27 : vector<1x8x16xf32> to vector<8x16xf32>
    %29 = arith.mulf %26, %28 : vector<8x16xf32>
    %c1_13 = arith.constant 1 : index
    %c0_14 = arith.constant 0 : index
    %c0_15 = arith.constant 0 : index
    %30 = vector.load %arg4[%c1_13, %c0_14, %c0_15] : memref<2x8x16xf32, #tpu.memory_space<vmem>>, vector<1x8x16xf32>
    %31 = vector.shape_cast %30 : vector<1x8x16xf32> to vector<8x16xf32>
    %32 = vector.shape_cast %29 : vector<8x16xf32> to vector<1x8x16xf32>
    tpu.vector_store %arg4[%c1_13, %c0_14, %c0_15], %32 {strides = array<i32>} : memref<2x8x16xf32, #tpu.memory_space<vmem>>, vector<1x8x16xf32>,
    return
  }
  func.func @transform_0(%arg0: i32) -> (i32, i32, i32) {
    %c0_i32 = arith.constant 0 : i32
    %c0_i32_0 = arith.constant 0 : i32
    %c0_i32_1 = arith.constant 0 : i32
    return %c0_i32, %arg0, %c0_i32_0 : i32, i32, i32
  }
  func.func @transform_1(%arg0: i32) -> (i32, i32, i32) {
    %c1_i32 = arith.constant 1 : i32
    %0 = arith.addi %arg0, %c1_i32 : i32
    %c1_i32_0 = arith.constant 1 : i32
    %1 = arith.muli %0, %c1_i32_0 : i32
    %c1_i32_1 = arith.constant 1 : i32
    %2 = arith.minsi %1, %c1_i32_1 : i32
    %c0_i32 = arith.constant 0 : i32
    %c0_i32_2 = arith.constant 0 : i32
    %c0_i32_3 = arith.constant 0 : i32
    return %c0_i32, %2, %c0_i32_2 : i32, i32, i32
  }
  func.func @transform_2(%arg0: i32) -> (i32, i32, i32) {
    %c0_i32 = arith.constant 0 : i32
    %c0_i32_0 = arith.constant 0 : i32
    %c0_i32_1 = arith.constant 0 : i32
    return %c0_i32, %arg0, %c0_i32_0 : i32, i32, i32
  }
  func.func @transform_3(%arg0: i32) -> (i32, i32, i32) {
    %c0_i32 = arith.constant 0 : i32
    %c0_i32_0 = arith.constant 0 : i32
    %c0_i32_1 = arith.constant 0 : i32
    return %c0_i32, %arg0, %c0_i32_0 : i32, i32, i32
  }
}

</mosaic_0001>

<bundles_post_ra>
// kernel: tpu_custom_call.1
= control target key start
LH: loop header
LB: loop body
LE: loop exit
PB: predicated region body
PF: predicated region fallthrough
CT: control target
= control target key end

     0   :  { %s1017_s0 = inlined_call_operand.hbm [shape: f32[1,16,16], index: 0, kind: input, shape index: {}]   ;;  %s1018_s1 = inlined_call_operand.hbm [shape: f32[1,16,16], index: 1, kind: input, shape index: {}]   ;;  %s1019_s2 = inlined_call_operand.hbm [shape: f32[2,16,16], index: 2, kind: input, shape index: {}]   ;;  %s1020_s3 = inlined_call_operand.hbm [shape: f32[2,16,16], index: 3, kind: output, shape index: {}]  }
   0x1   :  { %1028 = sst [smem:[#allocation19_spill]] %s1018_s1 }
   0x2   :  { %8 = vsyncpa [#allocation3], 0 }
   0x3   :  { %10 = vsyncpa [#allocation3 + $0x1], 0 }
   0x4   :  { %11 = vsyncpa [#allocation6], 0 }
   0x5   :  { %13 = vsyncpa [#allocation6 + $0x1], 0 }
   0x6   :  { %14 = vsyncpa [#allocation4], 0 }
   0x7   :  { %16 = vsyncpa [#allocation4 + $0x1], 0  ;;  %s768_s12 = smov 0   ;;  %s770_s13 = smov 0  }
   0x8   :  { %s772_s14 = smov 0   ;;  %s774_s15 = smov 0  }
   0x9   :  { %s776_s16 = smov 0   ;;  %s778_s17 = smov 0  }
   0xa   :  { %s780_s18 = smov 0  }
   0xb LB: > { %1029 = sst [smem:[#allocation13_spill]] %s723_s14  ;;  %s802_s19 = sadd.s32 4294967295, %s739_s18   ;;  %s739_s18 = sphi %s780_s18, %s1051_s18   ;;  %s735_s17 = sphi %s778_s17, %s1055_s17   ;;  %s731_s16 = sphi %s776_s16, %s1059_s16   ;;  %s727_s15 = sphi %s774_s15, %s1058_s15   ;;  %s723_s14 = sphi %s772_s14, %s1053_s14   ;;  %s719_s13 = sphi %s770_s13, %s1057_s13   ;;  %s715_s12 = sphi %s768_s12, %s1056_s12  }
   0xc   : > { %1030 = sst [smem:[#allocation14_spill]] %s735_s17  ;;  %s805_s20 = sadd.s32 1, %s739_s18  }
   0xd   : > { %1031 = sst [smem:[#allocation15_spill]] %s739_s18  ;;  %s26_s21 = ssub.s32 %s739_s18, %s805_s20 }
   0xe   : > { %1032 = sst [smem:[#allocation16_spill]] %s805_s20  ;;  %p37_p0 = scmp.eq.s32.totalorder %s739_s18, 0 }
   0xf   : > { %p810_p1 = scmp.eq.s32.totalorder %s26_s21, 0  ;;  %p1022_p2 = scmp.eq.s32.totalorder %s802_s19, 0 }
  0x10   : > { %p53_p3 = scmp.lt.s32.totalorder %s805_s20, 1  ;;  %s55_s23 = sadd.s32 1, %s805_s20 }
  0x11   : > { %p56_p4 = scmp.lt.s32.totalorder %s55_s23, 1  ;;  %s61_s24 = sadd.s32 1, %s723_s14 }
  0x12   : > { %s54_s25 = scalar_select %p53_p3, %s805_s20, 1 }
  0x13   : > { %s1061_s23 = smov (!%p56_p4, %s55_s23), 1  ;;  %p68_p5 = scmp.ne.s32.totalorder %s723_s14, %s719_s13 }
  0x14   : > { %p74_p6 = scmp.ne.s32.totalorder %s719_s13, %s715_s12  ;;  %s58_s26 = ssub.s32 %s54_s25, %s1061_s23 }
  0x15   : > { %p59_p8 = scmp.eq.s32.totalorder %s58_s26, 0  ;;  %p825_p9 = por %p68_p5, %p37_p0 }
  0x16   : > { %p831_p10 = por %p74_p6, %p1022_p2  ;;  %p1021_p11 = scmp.lt.s32.totalorder %s739_s18, 2 }
  0x17   : > { %s837_s29 = scalar_select %p59_p8, %s723_s14, %s61_s24  }
  0x18   : > { %s169_s30 = sand.u32 1, %s739_s18   ;;  %s171_s4 = sand.u32 1, %s723_s14  }
  0x19   : > { %1036 = sst [smem:[#allocation17_spill]] %s837_s29  ;;  %s448_s5 = sshll.u32 %s171_s4, 3 }
  0x1a   : > { %s449_s6 = sshll.u32 %s54_s25, 3  ;;  %s1037_s1 = sld [smem:[#allocation19_spill]] }
  0x1b   : > { %s173_s10 = scalar_lea.vmem [#allocation5], %s448_s5  ;;  %p848_p12 = pnand %p1021_p11, %p825_p9 }
  0x1c   : > { %s184_s11 = sshll.u32 %s173_s10, 4  ;;  %p452_p13 = scmp.ge.s32.totalorder %s739_s18, 1  ;;  %s185_s11 = int_to_ptr.vmem [resolvable:$true] %s184_s11 }
  0x1d   : > { %p210_p3 = scmp.lt.s32.totalorder %s739_s18, 3  ;;  %s854_s23 = scalar_lea.sflag [#allocation6], %s169_s30 }
  0x1e   : > { %p555_p5 = pneg %p848_p12 }
  0x20   : > { %s180_s9 = scalar_lea.hbm %s1037_s1, %s449_s6  ;;  %s558_s4 = scalar_lea.hbm %s1037_s1, 16 }
  0x21   : > { %s182_s12 = sshll.u32 %s180_s9, 4  ;;  %s183_s12 = int_to_ptr.hbm [resolvable:$true] %s182_s12 }
  0x22   : > { %s551_s24 = sshra.s32 %s183_s12, 4  ;;  %s552_s24 = int_to_ptr.hbm [resolvable:$true] %s551_s24 }
  0x23   : > { %s553_s25 = scalar_lea.hbm %s552_s24, 8  ;;  %p559_p9 = scmp.lt.s32.totalorder %s552_s24, %s1037_s1 }
  0x24   : > { %p554_p4 = scmp.ne.s32.totalorder %s552_s24, %s553_s25  ;;  %p560_p7 = scmp.lt.s32.totalorder %s558_s4, %s553_s25 }
  0x26   : > { %p556_p6 = pnand %p555_p5, %p554_p4  ;;  %p561_p11 = por %p560_p7, %p559_p9 }
  0x28   : > { %p557_p8 = pneg %p556_p6 }
  0x2a   : > { %p562_p2 = pnand %p561_p11, %p557_p8 }
  0x2c   : > { %565 = shalt.err (!%p562_p2)
}
  0x2d   : > { %478 = dma.hbm_to_vmem [thread:$0]  (!%p848_p12), %s183_s12, 128, %s185_s11, %s854_s23  }
  0x2e   : > { %p871_p2 = pnand %p452_p13, %p210_p3  ;;  %s443_s7 = sadd.s32 4294967294, %s739_s18  }
  0x2f   : > { %s29_s8 = sadd.s32 1, %s735_s17  ;;  %p36_p7 = scmp.ne.s32.totalorder %s735_s17, %s731_s16 }
  0x30   : > { %s880_s9 = scalar_select %p810_p1, %s735_s17, %s29_s8  }
  0x31   : > { %p42_p11 = scmp.ne.s32.totalorder %s731_s16, %s727_s15  ;;  %p124_p4 = scmp.eq.s32.totalorder %s802_s19, 1 }
  0x32   : > { %1040 = sst [smem:[#allocation18_spill]] %s880_s9  ;;  %p130_p5 = scmp.eq.s32.totalorder %s443_s7, 1 }
  0x33   : > { %p889_p6 = por %p37_p0, %p36_p7  ;;  %p1042_p12 = scmp.eq.s32.totalorder %s802_s19, 0 }
  0x34   : > { %p899_p3 = por %p124_p4, %p36_p7  ;;  %p903_p1 = por %p130_p5, %p42_p11 }
  0x35   : > { %p895_p13 = por %p1042_p12, %p42_p11  ;;  %s908_s21 = sand.u32 1, %s735_s17  }
  0x36   : > { %s1045_s12 = scalar_select %p903_p1, 1, 0 }
  0x37   : > { %s447_s24 = sshll.u32 %s739_s18, 3  ;;  %s446_s25 = sshll.u32 %s908_s21, 3 }
  0x38   : > { %s158_s4 = scalar_lea.hbm %s1017_s0, %s447_s24  ;;  %s154_s6 = scalar_lea.vmem [#allocation2], %s446_s25 }
  0x39   : > { %s160_s5 = sshll.u32 %s158_s4, 4  ;;  %s162_s7 = sshll.u32 %s154_s6, 4  ;;  %s161_s5 = int_to_ptr.hbm [resolvable:$true] %s160_s5  ;;  %s163_s7 = int_to_ptr.vmem [resolvable:$true] %s162_s7 }
  0x3a   : > { %p1046_p0 = scmp.lt.s32.totalorder %s739_s18, 2  ;;  %s450_s1 = sshll.u32 %s908_s21, 4 }
  0x3b   : > { %s199_s29 = scalar_lea.hbm %s1019_s2, %s447_s24  ;;  %s151_s27 = scalar_lea.sflag [#allocation3], %s908_s21 }
  0x3c   : > { %p919_p8 = pnand %p1046_p0, %p889_p6  ;;  %s200_s26 = sshll.u32 %s199_s29, 4  ;;  %s201_s26 = int_to_ptr.hbm [resolvable:$true] %s200_s26 }
  0x3d   : > { %s581_s4 = sshra.s32 %s161_s5, 4  ;;  %s588_s14 = scalar_lea.hbm %s1017_s0, 16  ;;  %s582_s4 = int_to_ptr.hbm [resolvable:$true] %s581_s4 }
  0x3e   : > { %s583_s25 = scalar_lea.hbm %s582_s4, 8  ;;  %p585_p7 = pneg %p919_p8 }
  0x3f   : > { %p584_p9 = scmp.ne.s32.totalorder %s582_s4, %s583_s25  ;;  %p589_p5 = scmp.lt.s32.totalorder %s582_s4, %s1017_s0 }
  0x40   : > { %p590_p6 = scmp.lt.s32.totalorder %s588_s14, %s583_s25 }
  0x41   : > { %p586_p11 = pnand %p585_p7, %p584_p9 }
  0x42   : > { %p591_p12 = por %p590_p6, %p589_p5 }
  0x43   : > { %p587_p4 = pneg %p586_p11 }
  0x45   : > { %p592_p0 = pnand %p591_p12, %p587_p4 }
  0x47   : > { %595 = shalt.err (!%p592_p0)
}
  0x48   : > { %475 = dma.hbm_to_vmem [thread:$0]  (!%p919_p8), %s161_s5, 128, %s163_s7, %s151_s27  }
  0x49   : > { %s195_s17 = scalar_lea.vmem [#allocation7], %s450_s1  ;;  %s611_s9 = sshra.s32 %s201_s26, 4  ;;  %s612_s9 = int_to_ptr.hbm [resolvable:$true] %s611_s9 }
  0x4a   : > { %s202_s29 = sshll.u32 %s195_s17, 4  ;;  %s613_s21 = scalar_lea.hbm %s612_s9, 16  ;;  %s203_s29 = int_to_ptr.vmem [resolvable:$true] %s202_s29 }
  0x4b   : > { %p614_p9 = scmp.ne.s32.totalorder %s612_s9, %s613_s21  ;;  %s618_s20 = scalar_lea.hbm %s1019_s2, 32 }
  0x4c   : > { %p619_p4 = scmp.lt.s32.totalorder %s612_s9, %s1019_s2  ;;  %p620_p5 = scmp.lt.s32.totalorder %s618_s20, %s613_s21 }
  0x4d   : > { %p616_p11 = pnand %p614_p9, %p585_p7 }
  0x4e   : > { %p621_p6 = por %p620_p5, %p619_p4 }
  0x4f   : > { %p617_p1 = pneg %p616_p11 }
  0x51   : > { %p622_p12 = pnand %p621_p6, %p617_p1 }
  0x53   : > { %625 = shalt.err (!%p622_p12)
}
  0x54   : > { %s741_s1 = smov 256   ;;  %s742_s5 = smov 128  }
  0x55   : > { %s743_s7 = smov 8   ;;  %214 = sbr.rel (%p871_p2) target bundleno = 224 (0xe0), region = 32 }
  0x56   : > { %481 = dma.hbm_to_vmem [thread:$0]  (!%p919_p8), %s201_s26, 256, %s203_s29, %s854_s23, %s741_s1, %s742_s5, %s743_s7  }
  0x57   : > { %s956_s27 = sand.u32 (!%p871_p2), 1, %s731_s16  }
  0x58   : > { %s453_s25 = sshll.u32 (!%p871_p2), %s956_s27, 3  ;;  %s217_s10 = scalar_lea.sflag (!%p871_p2), [#allocation3], %s956_s27 }
  0x59   : > { %s220_s6 = scalar_lea.vmem (!%p871_p2), [#allocation2], %s453_s25 }
  0x5a   : > { %698 = dma.done.wait (%p895_p13), %s217_s10, 128  }
  0x5b   : > { %700 = vsyncadd (%p895_p13), %s217_s10, 4294967168  ;;  %s226_s23 = sand.u32 1, %s802_s19   ;;  %s228_s30 = sand.u32 1, %s719_s13  }
  0x5c   : > { %s454_s8 = sshll.u32 %s228_s30, 3  ;;  %s227_s26 = scalar_lea.sflag [#allocation6], %s226_s23 }
  0x5d   : > { %s230_s17 = scalar_lea.vmem [#allocation5], %s454_s8 }
  0x5e   : > { %702 = dma.done.wait (%p831_p10), %s227_s26, 128  }
  0x5f   : > { %704 = vsyncadd (%p831_p10), %s227_s26, 4294967168  ;;  %s455_s29 = sshll.u32 %s956_s27, 4 }
  0x60   : > { %s240_s9 = scalar_lea.vmem [#allocation7], %s455_s29 }
  0x61   : > { %706 = dma.done.wait (%p895_p13), %s227_s26, 256  }
  0x62   : > { %708 = vsyncadd (%p895_p13), %s227_s26, 4294967040  ;;  %v277_v0 = vld [vmem:[%s220_s6] sm:$0xff]  ;;  %s744_s21 = smov 127   ;;  %v297_v1 = vlaneseq  ;;  %v289_v2 = vld [vmem:[%s230_s17] sm:$0x1]  ;;  %s457_s14 = sshll.u32 %s802_s19, 3 }
  0x63   : > { %279 = vrot.lane.b32.xlu0 %v277_v0, %s744_s21  ;;  %v290_v3 = vrot.slane %v277_v0, 1  ;;  %v293_v4 = vrot.slane %v289_v2, 1  ;;  %vm295_vm0 = vcmask 1046528   ;;  %v300_v6 = vstv %s457_s14  ;;  %v458_v11 = vld [vmem:[%s240_s9 + $0x8] sm:$0xff]  ;;  %s273_s28 = scalar_lea.vmem [#allocation8], %s455_s29  ;;  %s323_s19 = scalar_lea.hbm %s1020_s3, %s457_s14  ;;  %v285_v15 = vld [vmem:[%s240_s9] sm:$0xff] }
  0x64   : > { %v298_v5 = vshrl.u32 %v297_v1, 7  ;;  %vm287_vm2 = vcmask 130048   ;;  %vm282_vm3 = vcmask 121856   ;;  %s326_s20 = sshll.u32 %s323_s19, 4  ;;  %s324_s24 = sshll.u32 %s273_s28, 4  ;;  %s327_s20 = int_to_ptr.hbm [resolvable:$true] %s326_s20  ;;  %s325_s24 = int_to_ptr.vmem [resolvable:$true] %s324_s24 }
  0x65   : > { %v296_v7 = vsel %vm295_vm0, %v290_v3, %v293_v4  ;;  %s313_s4 = scalar_lea.sflag [#allocation4], %s956_s27  ;;  %s655_s1 = sshra.s32 %s327_s20, 4  ;;  %s656_s1 = int_to_ptr.hbm [resolvable:$true] %s655_s1 }
  0x66   : > { %v301_v8 = vadd.s32 %v300_v6, %v298_v5  ;;  %v303_v9 = vsub.f32 %v296_v7, %v277_v0  ;;  %s657_s5 = scalar_lea.hbm %s656_s1, 16  ;;  %s661_s10 = scalar_lea.hbm %s1020_s3, 32 }
  0x67   : > { %p658_p10 = scmp.ne.s32.totalorder %s656_s1, %s657_s5  ;;  %p662_p1 = scmp.lt.s32.totalorder %s656_s1, %s1020_s3 }
  0x68   : > { %vm302_vm1 = vcmp.lt.s32.totalorder %v301_v8, 15  ;;  %p663_p8 = scmp.lt.s32.totalorder %s661_s10, %s657_s5 }
  0x69   : > { %v306_v10 = vsel %vm302_vm1, %v303_v9, 0.0  ;;  %p659_p2 = pnand %p658_p10, %p899_p3 }
  0x6a   : > { %v309_v12 = vmul.f32 %v458_v11, %v306_v10  ;;  %p664_p7 = por %p663_p8, %p662_p1 }
  0x6b   : > { %p660_p13 = pneg %p659_p2 }
  0x6c   : > { %459 = vst.msk [vmem:[%s273_s28 + $0x8] sm:$0xff] %vm287_vm2, %v309_v12 }
  0x6d   : > { %p665_p0 = pnand %p664_p7, %p660_p13 }
  0xd5   : > { %v280_v13 = vpop.permute.xlu0 %279 }
  0xd6   : > { %v283_v14 = vsel %vm282_vm3, %v280_v13, %v277_v0 }
  0xd7   : > { %v284_v16 = vsub.f32 %v283_v14, %v277_v0 }
  0xd9   : > { %v286_v17 = vmul.f32 %v285_v15, %v284_v16 }
  0xdb   : > { %288 = vst.msk [vmem:[%s273_s28] sm:$0xff] %vm287_vm2, %v286_v17 }
  0xdc   : > { %668 = shalt.err (!%p665_p0)
}
  0xdd   : > { %s745_s27 = smov 128   ;;  %s746_s30 = smov 256  }
  0xde   : > { %s747_s8 = smov 8  }
  0xdf   : > { %470 = dma.vmem_to_hbm [thread:$0]  (%p899_p3), %s325_s24, 256, %s327_s20, %s313_s4, %s745_s27, %s746_s30, %s747_s8  }
  0xe0 PF: > { %s1048_s26 = sld [smem:[#allocation15_spill]]  ;;  %s341_s17 = sand.u32 1, %s727_s15  }
  0xe1   : > { %p1049_p9 = scmp.ne.s32.totalorder %s1045_s12, 0  ;;  %s342_s29 = scalar_lea.sflag [#allocation4], %s341_s17 }
  0xe6   : > { %p1050_p11 = scmp.ge.s32.totalorder %s1048_s26, 2 }
  0xe8   : > { %p483_p4 = pnand %p1050_p11, %p1049_p9 }
  0xea   : > { %p484_p5 = pneg %p483_p4 }
  0xec   : > { %710 = dma.done.wait (%p484_p5), %s342_s29, 256  }
  0xed   : > { %712 = vsyncadd (%p484_p5), %s342_s29, 4294967040  ;;  %s1051_s18 = sld [smem:[#allocation16_spill]]  ;;  %s1056_s12 = smov %s719_s13 }
  0xee   : > { %s1052_s9 = sld [smem:[#allocation13_spill]]  ;;  %s1058_s15 = smov %s731_s16 }
  0xef   : > { %s1053_s14 = sld [smem:[#allocation17_spill]] }
  0xf0   : > { %s1054_s21 = sld [smem:[#allocation14_spill]] }
  0xf1   : > { %s1055_s17 = sld [smem:[#allocation18_spill]] }
  0xf3   : > { %p19_p3 = scmp.ge.s32.totalorder %s1051_s18, 4  }
  0xf4   : > { %s1057_s13 = smov %s1052_s9 }
  0xf5   :  { %21 = sbr.rel (!%p19_p3) target bundleno = 11 (0xb), region = 103 }
  0xf6   : > { %s1059_s16 = smov %s1054_s21 }
  0xfa   :  { %348 = vsyncpa [#allocation3], 1 }
  0xfb   :  { %350 = vsyncpa [#allocation3 + $0x1], 1 }
  0xfc   :  { %351 = vsyncpa [#allocation6], 1 }
  0xfd   :  { %353 = vsyncpa [#allocation6 + $0x1], 1 }
  0xfe   :  { %354 = vsyncpa [#allocation4], 1 }
  0xff   :  { %356 = vsyncpa [#allocation4 + $0x1], 1 }

</bundles_post_ra>
